<compile_context>
chip_gen: v7x
topology: tpu7x:2x2x1
jax: 0.10.0
libtpu: 0.0.40
codegen_flags: <defaults>
</compile_context>

<pallas_src>
import functools

import jax
import jax.numpy as jnp
from jax import lax
from jax.experimental import pallas as pl
from jax.experimental.pallas import tpu as pltpu


def _pow_static(x, sharpen):
    """x ** sharpen with a static Python exponent.

    Small integer exponents become plain VPU multiplies (binary exponentiation);
    only non-integer exponents fall back to the EUP exp/log path.
    """
    s = float(sharpen)
    if s == 1.0:
        return x
    if s.is_integer() and 2.0 <= s <= 8.0:
        n = int(s)
        result = None
        base = x
        while n > 0:
            if n & 1:
                result = base if result is None else result * base
            n >>= 1
            if n:
                base = base * base
        return result
    return jnp.power(x, s)  # non-integer sharpen: transcendental fallback


def propagation_kernel(x_ref, w_ref, bias_ref, o_ref, xn_ref, vn_ref, *,
                       sharpen, clamp_value, eps, hw_tile, hw_chunk, hw_real):
    # x_ref:    (C, HW_pad)  one batch element, channels-first, spatial flattened (resident over j)
    # w_ref:    (C, C)       1x1-conv weight (out_ch, in_ch)
    # bias_ref: (C, 1)       1x1-conv bias
    # o_ref:    (C, T)       output tile for HW columns [j*T, (j+1)*T)
    # xn_ref:   (C, HW_pad)  VMEM scratch: L2-normalized x        (matmul dtype), cached per batch
    # vn_ref:   (C, HW_pad)  VMEM scratch: L2-normalized conv out (matmul dtype), cached per batch
    f32 = jnp.float32
    t = hw_tile
    kc = hw_chunk
    hw_pad = x_ref.shape[1]
    nchunks = hw_pad // kc
    c_dim = o_ref.shape[0]
    j = pl.program_id(1)

    # ---- Per-batch work, hoisted out of the HW-tile axis (j): run only on j == 0. ----
    @pl.when(j == 0)
    def _init():
        x = x_ref[...].astype(f32)        # (C, HW_pad)
        w = w_ref[...].astype(f32)        # (C, C)
        bias = bias_ref[...].astype(f32)  # (C, 1)

        # 1x1 conv == per-pixel channel matmul (MXU), then L2-normalize along channels.
        # rsqrt(max(sumsq, eps^2)) == 1 / max(norm, eps): EUP rsqrt + VPU multiply, no divides.
        value = jnp.dot(w, x, preferred_element_type=f32) + bias                 # (C, HW_pad)
        v_inv = lax.rsqrt(jnp.maximum(jnp.sum(value * value, axis=0, keepdims=True), eps * eps))
        value_n = value * v_inv                                                  # (C, HW_pad)

        x_inv = lax.rsqrt(jnp.maximum(jnp.sum(x * x, axis=0, keepdims=True), eps * eps))
        x_n = x * x_inv                                                          # (C, HW_pad)

        if hw_real < hw_pad:
            # Zero value_n on padded columns so they contribute nothing to any output column.
            # (Padded x columns are already exactly zero, hence x_n is zero there too.)
            col = lax.broadcasted_iota(jnp.int32, (1, hw_pad), 1)
            value_n = jnp.where(col < hw_real, value_n, 0.0)

        xn_ref[...] = x_n.astype(xn_ref.dtype)
        vn_ref[...] = value_n.astype(vn_ref.dtype)

    # ---- Per-tile work: chunked cosine + propagation, f32 accumulation. ----
    jt = pl.multiple_of(j * t, t)
    x_n_t = xn_ref[:, pl.ds(jt, t)]                                              # (C, T)

    def chunk_term(x_n_c, v_n_c):
        # cosine rows for this tile/chunk: contract the channel axis of both (C,*) operands
        # directly (cosine is symmetric -> no transpose is ever materialized).
        cos = lax.dot_general(x_n_t, x_n_c, (((0,), (0,)), ((), ())),
                              preferred_element_type=f32)                        # (T, Kc)
        cos = jnp.maximum(cos, clamp_value)          # clamp/pow stay in f32 (VPU)
        cos = _pow_static(cos, sharpen)
        # out_tile += value_n_chunk @ cos^T, as a contraction over the chunk's HW axis.
        return lax.dot_general(v_n_c, cos.astype(v_n_c.dtype),
                               (((1,), (1,)), ((), ())),
                               preferred_element_type=f32)                       # (C, T)

    if nchunks == 1:
        out = chunk_term(xn_ref[...], vn_ref[...])
    elif nchunks <= 8:
        out = jnp.zeros((c_dim, t), f32)
        for k in range(nchunks):  # static offsets -> zero-cost ref views
            out = out + chunk_term(xn_ref[:, k * kc:(k + 1) * kc],
                                   vn_ref[:, k * kc:(k + 1) * kc])
    else:
        def body(k, acc):
            kk = pl.multiple_of(k * kc, kc)
            return acc + chunk_term(xn_ref[:, pl.ds(kk, kc)],
                                    vn_ref[:, pl.ds(kk, kc)])
        out = lax.fori_loop(0, nchunks, body, jnp.zeros((c_dim, t), f32))

    o_ref[...] = out.astype(o_ref.dtype)


def _pick_tile(hw_pad, cap=512):
    """Largest multiple of 128 that divides hw_pad and is <= cap (hw_pad itself if small)."""
    if hw_pad <= cap:
        return hw_pad
    t = (cap // 128) * 128
    while t > 128 and hw_pad % t != 0:
        t -= 128
    return max(t, 128)


def _vmem_limit_bytes(c, hw_pad, t, kc, mm_bytes):
    f32b = 4
    pipelined = 2 * c * hw_pad * f32b + 2 * c * c * f32b + 2 * c * f32b + 2 * c * t * f32b
    scratch = 2 * c * hw_pad * mm_bytes                      # x_n + value_n caches
    internal = 4 * c * hw_pad * f32b + t * kc * f32b + 2 * c * t * f32b
    est = pipelined + scratch + internal + (8 << 20)          # compiler-scratch headroom
    # Cap at 40 MiB so it fits v7x's 64 MiB per-TC VMEM with headroom (plenty for v5e/v6e 128 MiB).
    return int(min(max(est, 32 << 20), 40 << 20))


def propagation(x, w, bias, *, sharpen, clamp_value, eps=1e-12, use_bf16_matmul=True):
    """x: (B, C, H, W) NCHW float32; w: (C, C); bias: (C,). Returns (B, C, H, W).

    use_bf16_matmul=True (default) feeds bf16 operands to the MXU (full rate on v5e/v6e/v7x)
    with f32 accumulation; ~1e-3 relative error. Set False for exact f32 matmuls.
    """
    if not float(sharpen).is_integer():
        assert clamp_value > 0, "non-integer sharpen with clamp_value <= 0 would NaN"

    b, c, h, ww = x.shape
    hw = h * ww
    hw_pad = ((hw + 127) // 128) * 128        # keep output lane-dense; padded cols are masked

    x_flat = x.reshape(b, c, hw)
    if hw_pad != hw:
        x_flat = jnp.pad(x_flat, ((0, 0), (0, 0), (0, hw_pad - hw)))
    bias2d = bias.reshape(c, 1)

    t = _pick_tile(hw_pad, 512)               # output tile width
    kc = _pick_tile(hw_pad, 512)              # HW contraction chunk
    mm_dtype = jnp.bfloat16 if use_bf16_matmul else jnp.float32

    kernel = functools.partial(
        propagation_kernel,
        sharpen=sharpen,
        clamp_value=clamp_value,
        eps=eps,
        hw_tile=t,
        hw_chunk=kc,
        hw_real=hw,
    )

    out = pl.pallas_call(
        kernel,
        out_shape=jax.ShapeDtypeStruct((b, c, hw_pad), x.dtype),
        grid_spec=pltpu.PrefetchScalarGridSpec(
            num_scalar_prefetch=0,
            grid=(b, hw_pad // t),
            in_specs=[
                # x stays resident across the HW-tile axis (block index depends only on b).
                pl.BlockSpec((None, c, hw_pad), lambda bi, j: (bi, 0, 0)),
                pl.BlockSpec((c, c), lambda bi, j: (0, 0)),    # conv weight
                pl.BlockSpec((c, 1), lambda bi, j: (0, 0)),    # conv bias
            ],
            # (C, T) output tile: last dim lane-dense (multiple of 128 or full HW_pad).
            out_specs=pl.BlockSpec((None, c, t), lambda bi, j: (bi, 0, j)),
            scratch_shapes=[
                pltpu.VMEM((c, hw_pad), mm_dtype),   # x_n cache (per batch element)
                pltpu.VMEM((c, hw_pad), mm_dtype),   # value_n cache (per batch element)
            ],
        ),
        compiler_params=pltpu.CompilerParams(
            # j must be "arbitrary": the per-batch scratch caches are written under
            # pl.when(j == 0), so j may not be sharded across cores. Batch stays parallel.
            dimension_semantics=("parallel", "arbitrary"),
            vmem_limit_bytes=_vmem_limit_bytes(c, hw_pad, t, kc,
                                               2 if use_bf16_matmul else 4),
        ),
    )(x_flat, w, bias2d)

    if hw_pad != hw:
        out = out[:, :, :hw]
    return out.reshape(b, c, h, ww)


def propagation_reference(x, w, bias, *, sharpen, clamp_value, eps=1e-12):
    b, c, h, ww = x.shape
    value = jnp.einsum("oc,bchw->bohw", w, x) + bias[None, :, None, None]

    def l2n(tt):
        n = jnp.sqrt(jnp.sum(tt * tt, axis=1, keepdims=True))
        return tt / jnp.maximum(n, eps)

    value = l2n(value).reshape(b, c, -1)
    xn = l2n(x).reshape(b, c, -1)
    cosine = jnp.maximum(jnp.einsum("bcm,bcn->bmn", xn, xn), clamp_value) ** sharpen
    out = jnp.einsum("bcm,bnm->bcn", value, cosine).reshape(b, c, h, ww)
    return out


def _rel_err(a, b):
    num = jnp.sqrt(jnp.sum((a - b) ** 2))
    den = jnp.maximum(jnp.sqrt(jnp.sum(b ** 2)), 1e-6)
    return float(num / den)


if __name__ == "__main__":
    # Module config: sharpen, clamp_value, in_channel == out_channel == C
    sharpen = 2.0
    clamp_value = 0.1

    key = jax.random.PRNGKey(0)
    kx, kw, kb, kx2, kx3 = jax.random.split(key, 5)

    B, C = 2, 4
    conv_w = jax.random.normal(kw, (C, C), dtype=jnp.float32) * 0.2
    conv_b = jax.random.normal(kb, (C,), dtype=jnp.float32) * 0.1

    # Test 1: small shape from the module spec (single HW tile), exact f32 matmuls.
    H, W = 16, 16
    x = jax.random.normal(kx, (B, C, H, W), dtype=jnp.float32)
    out = propagation(x, conv_w, conv_b, sharpen=sharpen, clamp_value=clamp_value,
                      use_bf16_matmul=False)
    out = jax.block_until_ready(out)
    ref = propagation_reference(x, conv_w, conv_b, sharpen=sharpen, clamp_value=clamp_value)
    assert out.shape == (B, C, H, W)
    assert jnp.allclose(out, ref, atol=1e-4, rtol=1e-4), "mismatch vs reference (16x16, f32)"

    # Test 2: 32x32 spatial exercises the tiled path (HW=1024 -> T=512, Kc=512, grid=(2,2),
    # per-batch scratch cache + 2-chunk HW contraction), exact f32 matmuls.
    H2, W2 = 32, 32
    x2 = jax.random.normal(kx2, (B, C, H2, W2), dtype=jnp.float32)
    out2 = propagation(x2, conv_w, conv_b, sharpen=sharpen, clamp_value=clamp_value,
                       use_bf16_matmul=False)
    out2 = jax.block_until_ready(out2)
    ref2 = propagation_reference(x2, conv_w, conv_b, sharpen=sharpen, clamp_value=clamp_value)
    assert out2.shape == (B, C, H2, W2)
    assert jnp.allclose(out2, ref2, atol=1e-4, rtol=1e-4), "mismatch vs reference (32x32, f32)"

    # Test 3: default bf16 MXU path on the 32x32 case (f32 accumulation, ~1e-3 rel error).
    out2_bf16 = propagation(x2, conv_w, conv_b, sharpen=sharpen, clamp_value=clamp_value)
    out2_bf16 = jax.block_until_ready(out2_bf16)
    assert _rel_err(out2_bf16, ref2) < 2e-2, "bf16 matmul path error too large (32x32)"

    # Test 4: non-128-multiple HW (10x10 -> HW=100, padded to 128 and masked), exact f32.
    H3, W3 = 10, 10
    x3 = jax.random.normal(kx3, (B, C, H3, W3), dtype=jnp.float32)
    out3 = propagation(x3, conv_w, conv_b, sharpen=sharpen, clamp_value=clamp_value,
                       use_bf16_matmul=False)
    out3 = jax.block_until_ready(out3)
    ref3 = propagation_reference(x3, conv_w, conv_b, sharpen=sharpen, clamp_value=clamp_value)
    assert out3.shape == (B, C, H3, W3)
    assert jnp.allclose(out3, ref3, atol=1e-4, rtol=1e-4), "mismatch vs reference (10x10, padded)"

    print("KERNEL_OK")
</pallas_src>

<mosaic_0001>
module attributes {stable_mosaic.version = 11 : i64} {
  func.func @propagation_kernel(%arg0: i32, %arg1: i32, %arg2: memref<1x4x256xf32, #tpu.memory_space<vmem>>, %arg3: memref<4x4xf32, #tpu.memory_space<vmem>>, %arg4: memref<4x1xf32, #tpu.memory_space<vmem>>, %arg5: memref<1x4x256xf32, #tpu.memory_space<vmem>>, %arg6: memref<4x256xf32, #tpu.memory_space<vmem>>, %arg7: memref<4x256xf32, #tpu.memory_space<vmem>>) attributes {dimension_semantics = [#tpu.dimension_semantics<parallel>, #tpu.dimension_semantics<arbitrary>], iteration_bounds = array<i64: 2, 1>, scalar_prefetch = 0 : i64, scratch_operands = 2 : i64, tpu.core_type = #tpu.core_type<tc>, window_params = [{transform_indices = @transform_0, window_bounds = array<i64: 1, 4, 256>}, {pipeline_mode = #tpu.pipeline_mode<synchronous>, transform_indices = @transform_1, window_bounds = array<i64: 4, 4>}, {pipeline_mode = #tpu.pipeline_mode<synchronous>, transform_indices = @transform_2, window_bounds = array<i64: 4, 1>}, {transform_indices = @transform_3, window_bounds = array<i64: 1, 4, 256>}]} {
    %c0_i32 = arith.constant 0 : i32
    %0 = arith.cmpi eq, %arg1, %c0_i32 : i32
    %1 = arith.extui %0 : i1 to i32
    %c0_i32_0 = arith.constant 0 : i32
    %2 = arith.cmpi ne, %1, %c0_i32_0 : i32
    scf.if %2 {
      %c0_10 = arith.constant 0 : index
      %c0_11 = arith.constant 0 : index
      %c0_12 = arith.constant 0 : index
      %17 = vector.load %arg2[%c0_10, %c0_11, %c0_12] : memref<1x4x256xf32, #tpu.memory_space<vmem>>, vector<1x4x256xf32>
      %18 = vector.shape_cast %17 : vector<1x4x256xf32> to vector<4x256xf32>
      %c0_13 = arith.constant 0 : index
      %c0_14 = arith.constant 0 : index
      %19 = vector.load %arg3[%c0_13, %c0_14] : memref<4x4xf32, #tpu.memory_space<vmem>>, vector<4x4xf32>
      %c0_15 = arith.constant 0 : index
      %c0_16 = arith.constant 0 : index
      %20 = vector.load %arg4[%c0_15, %c0_16] : memref<4x1xf32, #tpu.memory_space<vmem>>, vector<4x1xf32>
      %cst_17 = arith.constant dense<0.000000e+00> : vector<4x256xf32>
      %21 = tpu.matmul %19, %18, %cst_17 {dimension_numbers = #tpu.dot_dimension_numbers<[1], [0], [0], [1], [0, 0, 1, 1], [], []>} : vector<4x4xf32>, vector<4x256xf32>, vector<4x256xf32> -> vector<4x256xf32>
      %22 = vector.broadcast %20 : vector<4x1xf32> to vector<4x256xf32>
      %23 = arith.addf %21, %22 : vector<4x256xf32>
      %24 = arith.mulf %23, %23 : vector<4x256xf32>
      %cst_18 = arith.constant dense<0.000000e+00> : vector<256xf32>
      %25 = vector.multi_reduction <add>, %24, %cst_18 [0] : vector<4x256xf32> to vector<256xf32>
      %26 = vector.shape_cast %25 : vector<256xf32> to vector<1x256xf32>
      %cst_19 = arith.constant 1.000000e-24 : f32
      %27 = vector.broadcast %cst_19 : f32 to vector<1x256xf32>
      %28 = arith.maximumf %26, %27 : vector<1x256xf32>
      %29 = math.rsqrt %28 : vector<1x256xf32>
      %30 = vector.broadcast %29 : vector<1x256xf32> to vector<4x256xf32>
      %31 = arith.mulf %23, %30 : vector<4x256xf32>
      %32 = arith.mulf %18, %18 : vector<4x256xf32>
      %cst_20 = arith.constant dense<0.000000e+00> : vector<256xf32>
      %33 = vector.multi_reduction <add>, %32, %cst_20 [0] : vector<4x256xf32> to vector<256xf32>
      %34 = vector.shape_cast %33 : vector<256xf32> to vector<1x256xf32>
      %cst_21 = arith.constant 1.000000e-24 : f32
      %35 = vector.broadcast %cst_21 : f32 to vector<1x256xf32>
      %36 = arith.maximumf %34, %35 : vector<1x256xf32>
      %37 = math.rsqrt %36 : vector<1x256xf32>
      %38 = vector.broadcast %37 : vector<1x256xf32> to vector<4x256xf32>
      %39 = arith.mulf %18, %38 : vector<4x256xf32>
      %c0_22 = arith.constant 0 : index
      %c0_23 = arith.constant 0 : index
      %40 = vector.load %arg6[%c0_22, %c0_23] : memref<4x256xf32, #tpu.memory_space<vmem>>, vector<4x256xf32>
      tpu.vector_store %arg6[%c0_22, %c0_23], %39 {strides = array<i32>} : memref<4x256xf32, #tpu.memory_space<vmem>>, vector<4x256xf32>,
      %c0_24 = arith.constant 0 : index
      %c0_25 = arith.constant 0 : index
      %41 = vector.load %arg7[%c0_24, %c0_25] : memref<4x256xf32, #tpu.memory_space<vmem>>, vector<4x256xf32>
      tpu.vector_store %arg7[%c0_24, %c0_25], %31 {strides = array<i32>} : memref<4x256xf32, #tpu.memory_space<vmem>>, vector<4x256xf32>,
    } else {
    }
    %c256_i32 = arith.constant 256 : i32
    %3 = arith.muli %arg1, %c256_i32 : i32
    %4 = tpu.assume_multiple %3, 256 : i32
    %c0 = arith.constant 0 : index
    %5 = arith.index_cast %4 : i32 to index
    %6 = vector.load %arg6[%c0, %5] : memref<4x256xf32, #tpu.memory_space<vmem>>, vector<4x256xf32>
    %c0_1 = arith.constant 0 : index
    %c0_2 = arith.constant 0 : index
    %7 = vector.load %arg6[%c0_1, %c0_2] : memref<4x256xf32, #tpu.memory_space<vmem>>, vector<4x256xf32>
    %c0_3 = arith.constant 0 : index
    %c0_4 = arith.constant 0 : index
    %8 = vector.load %arg7[%c0_3, %c0_4] : memref<4x256xf32, #tpu.memory_space<vmem>>, vector<4x256xf32>
    %cst = arith.constant dense<0.000000e+00> : vector<256x256xf32>
    %9 = tpu.matmul %6, %7, %cst {dimension_numbers = #tpu.dot_dimension_numbers<[0], [0], [1], [1], [0, 1, 1, 1], [], []>} : vector<4x256xf32>, vector<4x256xf32>, vector<256x256xf32> -> vector<256x256xf32>
    %cst_5 = arith.constant 1.000000e-01 : f32
    %10 = vector.broadcast %cst_5 : f32 to vector<256x256xf32>
    %11 = arith.maximumf %9, %10 : vector<256x256xf32>
    %12 = arith.mulf %11, %11 : vector<256x256xf32>
    %cst_6 = arith.constant dense<0.000000e+00> : vector<4x256xf32>
    %13 = tpu.matmul %8, %12, %cst_6 {dimension_numbers = #tpu.dot_dimension_numbers<[1], [1], [0], [0], [0, 0, 1, 0], [], []>} : vector<4x256xf32>, vector<256x256xf32>, vector<4x256xf32> -> vector<4x256xf32>
    %c0_7 = arith.constant 0 : index
    %c0_8 = arith.constant 0 : index
    %c0_9 = arith.constant 0 : index
    %14 = vector.load %arg5[%c0_7, %c0_8, %c0_9] : memref<1x4x256xf32, #tpu.memory_space<vmem>>, vector<1x4x256xf32>
    %15 = vector.shape_cast %14 : vector<1x4x256xf32> to vector<4x256xf32>
    %16 = vector.shape_cast %13 : vector<4x256xf32> to vector<1x4x256xf32>
    tpu.vector_store %arg5[%c0_7, %c0_8, %c0_9], %16 {strides = array<i32>} : memref<1x4x256xf32, #tpu.memory_space<vmem>>, vector<1x4x256xf32>,
    return
  }
  func.func @transform_0(%arg0: i32, %arg1: i32) -> (i32, i32, i32) {
    %c0_i32 = arith.constant 0 : i32
    %c0_i32_0 = arith.constant 0 : i32
    %c0_i32_1 = arith.constant 0 : i32
    return %arg0, %c0_i32, %c0_i32_0 : i32, i32, i32
  }
  func.func @transform_1(%arg0: i32, %arg1: i32) -> (i32, i32) {
    %c0_i32 = arith.constant 0 : i32
    %c0_i32_0 = arith.constant 0 : i32
    %c0_i32_1 = arith.constant 0 : i32
    return %c0_i32, %c0_i32_0 : i32, i32
  }
  func.func @transform_2(%arg0: i32, %arg1: i32) -> (i32, i32) {
    %c0_i32 = arith.constant 0 : i32
    %c0_i32_0 = arith.constant 0 : i32
    %c0_i32_1 = arith.constant 0 : i32
    return %c0_i32, %c0_i32_0 : i32, i32
  }
  func.func @transform_3(%arg0: i32, %arg1: i32) -> (i32, i32, i32) {
    %c0_i32 = arith.constant 0 : i32
    %c0_i32_0 = arith.constant 0 : i32
    return %arg0, %c0_i32, %arg1 : i32, i32, i32
  }
}

</mosaic_0001>

<bundles_post_ra>
// kernel: tpu_custom_call.1
= control target key start
LH: loop header
LB: loop body
LE: loop exit
PB: predicated region body
PF: predicated region fallthrough
CT: control target
= control target key end

     0   :  { %8 = vsyncpa [#allocation5], 0  ;;  %s1693_s0 = inlined_call_operand.hbm [shape: f32[2,4,256], index: 0, kind: input, shape index: {}]   ;;  %s1694_s1 = inlined_call_operand.vmem [shape: f32[4,4], index: 1, kind: input, shape index: {}]   ;;  %s1695_s2 = inlined_call_operand.vmem [shape: f32[4,1], index: 2, kind: input, shape index: {}]   ;;  %s1696_s3 = inlined_call_operand.hbm [shape: f32[2,4,256], index: 3, kind: output, shape index: {}]  }
   0x1   :  { %10 = vsyncpa [#allocation5 + $0x1], 0 }
   0x2   :  { %11 = vsyncpa [#allocation6], 0 }
   0x3   :  { %13 = vsyncpa [#allocation6 + $0x1], 0  ;;  %s1426_s12 = smov 0   ;;  %s1428_s13 = smov 0  }
   0x4   :  { %s1430_s14 = smov 0   ;;  %s1432_s15 = smov 0  }
   0x5   :  { %s1434_s16 = smov 0   ;;  %s1436_s17 = smov 0  }
   0x6 LB: > { %s1094_s18 = sadd.s32 4294967295, %s1400_s17   ;;  %s1095_s19 = sadd.s32 4294967294, %s1400_s17   ;;  %s1400_s17 = sphi %s1436_s17, %s19_s17   ;;  %s1396_s16 = sphi %s1434_s16, %s1712_s16   ;;  %s1392_s15 = sphi %s1432_s15, %s1711_s15   ;;  %s1388_s14 = sphi %s1430_s14, %s1710_s14   ;;  %s1384_s13 = sphi %s1428_s13, %s1709_s13   ;;  %s1380_s12 = sphi %s1426_s12, %s1708_s12  }
   0x7   : > { %s31_s20 = sadd.s32 1, %s1396_s16  ;;  %s38_s21 = sadd.s32 1, %s1388_s14 }
   0x8   : > { %p33_p0 = scmp.ge.s32.totalorder %s31_s20, 2  ;;  %p45_p1 = scmp.ne.s32.totalorder %s1388_s14, %s1384_s13 }
   0x9   : > { %p46_p2 = scmp.eq.s32.totalorder %s1400_s17, 0  ;;  %p51_p3 = scmp.ne.s32.totalorder %s1384_s13, %s1380_s12 }
   0xa   : > { %s1714_s20 = smov (%p33_p0, %s31_s20), 0  ;;  %p52_p5 = scmp.eq.s32.totalorder %s1094_s18, 0 }
   0xb   : > { %p1467_p4 = por %p46_p2, %p45_p1  ;;  %s35_s23 = ssub.s32 %s1396_s16, %s1714_s20 }
   0xc   : > { %p119_p6 = scmp.eq.s32.totalorder %s1094_s18, 1  ;;  %p36_p7 = scmp.eq.s32.totalorder %s35_s23, 0 }
   0xd   : > { %p1473_p8 = por %p52_p5, %p51_p3  ;;  %p125_p10 = scmp.eq.s32.totalorder %s1095_s19, 1 }
   0xe   : > { %p1477_p9 = por %p119_p6, %p45_p1  ;;  %p1225_p13 = scmp.lt.s32.totalorder %s1400_s17, 2 }
   0xf   : > { %s1482_s26 = scalar_select %p36_p7, %s1388_s14, %s38_s21  }
  0x10   : > { %s1700_s25 = scalar_select %p1477_p9, 1, 0 }
  0x11   : > { %p1484_p11 = por %p125_p10, %p51_p3  ;;  %s151_s28 = sand.u32 1, %s1388_s14  }
  0x12   : > { %s1098_s29 = sshll.u32 %s151_s28, 3  ;;  %s1146_s30 = sshll.u32 %s1396_s16, 7 }
  0x13   : > { %s1701_s27 = scalar_select %p1484_p11, 1, 0 }
  0x14   : > { %s1495_s6 = scalar_lea.hbm %s1693_s0, %s1146_s30  ;;  %s155_s7 = scalar_lea.vmem [#allocation4], %s1098_s29 }
  0x15   : > { %s163_s8 = sshll.u32 %s155_s7, 4  ;;  %p1501_p0 = pnand %p1225_p13, %p1467_p4  ;;  %s1497_s8 = int_to_ptr.vmem [resolvable:$true] %s163_s8 }
  0x16   : > { %s152_s10 = scalar_lea.sflag [#allocation5], %s151_s28  ;;  %s1288_s11 = scalar_lea.hbm %s1495_s6, 128 }
  0x17   : > { %p1289_p3 = scmp.ne.s32.totalorder %s1495_s6, %s1288_s11  ;;  %p1290_p5 = pneg %p1501_p0 }
  0x18   : > { %s1293_s21 = scalar_lea.hbm %s1693_s0, 256  ;;  %p1294_p4 = scmp.lt.u32.totalorder %s1495_s6, %s1693_s0 }
  0x19   : > { %p1291_p6 = pnand %p1290_p5, %p1289_p3  ;;  %p1295_p10 = scmp.lt.u32.totalorder %s1293_s21, %s1288_s11 }
  0x1a   : > { %p1297_p12 = scmp.lt.u32.totalorder %s1288_s11, %s1495_s6 }
  0x1b   : > { %p1292_p7 = pneg %p1291_p6  ;;  %p1296_p13 = por %p1295_p10, %p1294_p4 }
  0x1d   : > { %p1298_p1 = por %p1297_p12, %p1296_p13 }
  0x1f   : > { %p1299_p2 = pnand %p1298_p1, %p1292_p7 }
  0x21   : > { %1302 = shalt.err (!%p1299_p2)
}
  0x22   : > { %s1303_s28 = scalar_lea.vmem %s1497_s8, 128  ;;  %s1402_s29 = smov [#allocation4]  }
  0x23   : > { %p1304_p3 = scmp.ne.s32.totalorder %s1497_s8, %s1303_s28  ;;  %s1308_s30 = sshll.u32 %s1402_s29, 4  ;;  %s1309_s30 = int_to_ptr.vmem [resolvable:$false] %s1308_s30 }
  0x24   : > { %s1310_s4 = scalar_lea.vmem %s1309_s30, 256  ;;  %p1311_p9 = scmp.lt.s32.totalorder %s1497_s8, %s1309_s30 }
  0x25   : > { %p1306_p6 = pnand %p1304_p3, %p1290_p5  ;;  %p1312_p4 = scmp.lt.s32.totalorder %s1310_s4, %s1303_s28 }
  0x27   : > { %p1307_p11 = pneg %p1306_p6  ;;  %p1313_p10 = por %p1312_p4, %p1311_p9 }
  0x29   : > { %p1314_p12 = pnand %p1313_p10, %p1307_p11 }
  0x2b   : > { %1317 = shalt.err (!%p1314_p12)
}
  0x2c   : > { %1220 = dma.hbm_to_vmem [thread:$0]  (!%p1501_p0), %s1495_s6, 128, %s1497_s8, %s152_s10  }
  0x2d   : > { %p1703_p1 = scmp.lt.s32.totalorder %s1400_s17, 3  ;;  %p1704_p2 = scmp.ge.s32.totalorder %s1400_s17, 1 }
  0x2f   : > { %p169_p5 = pnand %p1704_p2, %p1703_p1 }
  0x30   : > { %s1537_s5 = sand.u32 (!%p169_p5), 1, %s1384_s13  }
  0x31   : > { %172 = sbr.rel (%p169_p5) target bundleno = 801 (0x321), region = 32  ;;  %s1102_s7 = sshll.u32 (!%p169_p5), %s1537_s5, 3 }
  0x32   : > { %s175_s11 = scalar_lea.sflag (!%p169_p5), [#allocation5], %s1537_s5  ;;  %s178_s9 = scalar_lea.vmem (!%p169_p5), [#allocation4], %s1102_s7 }
  0x38   : > { %1371 = dma.done.wait (%p1473_p8), %s175_s11, 128  }
  0x39   : > { %1373 = vsyncadd (%p1473_p8), %s175_s11, 4294967168  ;;  %v1403_v0 = vmov 0.0   ;;  %v206_v1 = vld [vmem:[%s178_s9] sm:$0xff]  ;;  %vm220_vm0 = vcmask 1043456   ;;  %vm216_vm1 = vcmask 31744   ;;  %v1404_v28 = vmov 0  }
  0x3a   : > { %594 = vmatprep.mubr.f32.mxu1 %v1403_v0  ;;  %289 = vmatprep.mubr.f32.mxu0 %v1403_v0  ;;  %v318_v2 = vmul.f32 %v206_v1, %v206_v1  ;;  %v215_v25 = vcombine.high %v206_v1, %v206_v1  ;;  %v207_v26 = vld [vmem:[%s1694_s1] sm:$0xf]  ;;  %s1147_s18 = sshll.u32 %s1392_s15, 7  ;;  %s200_s19 = scalar_lea.vmem [#allocation7], %s1102_s7 }
  0x3b   : > { %v208_v27 = vld [vmem:[%s1695_s2] sm:$0xf]  ;;  %1277 = vset.pattern.permute.xlu1 %v1404_v28  ;;  %s1011_s21 = sshll.u32 %s200_s19, 4  ;;  %s1644_s28 = scalar_lea.hbm %s1696_s3, %s1147_s18  ;;  %s1646_s21 = int_to_ptr.vmem [resolvable:$true] %s1011_s21 }
  0x3c   : > { %v320_v3 = vcombine.high %v318_v2, %v318_v2  ;;  %v322_v4 = vsel %vm220_vm0, %v318_v2, 0.0  ;;  %1104 = vmatprep.subr.msk.mxu0 %vm220_vm0, %v215_v25  ;;  %211 = vperm.xlu1 %1277, %v208_v27   ;;  %s995_s29 = scalar_lea.sflag [#allocation6], %s1537_s5  ;;  %s1318_s30 = scalar_lea.vmem %s1646_s21, 128 }
  0x3d   : > { %v323_v5 = vrot.slane %v322_v4, 4  ;;  %1105 = vmatpush1.msk.msra.mxu0 %vm220_vm0, %v206_v1  ;;  %p1319_p8 = scmp.ne.s32.totalorder %s1646_s21, %s1318_s30  ;;  %p1705_p9 = scmp.ne.s32.totalorder %s1700_s25, 0 }
  0x3e   : > { %v329_v6 = vsel %vm220_vm0, %v320_v3, 0.0  ;;  %1106 = vmatmul.mubr.msk.f32.vlgmr.msra.gmra.mrb[0].mxu0 %vm216_vm1, %v207_v26  ;;  %s1405_s15 = smov [#allocation7]  }
  0x3f   : > { %v324_v7 = vadd.f32 %v323_v5, %v322_v4  ;;  %v330_v8 = vrot.slane %v329_v6, 4  ;;  %p1320_p11 = pnand %p1319_p8, %p1705_p9  ;;  %s1322_s4 = sshll.u32 %s1405_s15, 4  ;;  %s1323_s4 = int_to_ptr.vmem [resolvable:$false] %s1322_s4 }
  0x40   : > { %s1324_s7 = scalar_lea.vmem %s1323_s4, 256  ;;  %p1325_p7 = scmp.lt.s32.totalorder %s1646_s21, %s1323_s4 }
  0x41   : > { %v325_v9 = vrot.slane %v324_v7, 2  ;;  %v331_v10 = vadd.f32 %v330_v8, %v329_v6  ;;  %p1321_p0 = pneg %p1320_p11  ;;  %p1326_p13 = scmp.lt.s32.totalorder %s1324_s7, %s1318_s30 }
  0x43   : > { %v326_v11 = vadd.f32 %v325_v9, %v324_v7  ;;  %v332_v12 = vrot.slane %v331_v10, 2  ;;  %p1327_p3 = por %p1326_p13, %p1325_p7 }
  0x45   : > { %v327_v13 = vrot.slane %v326_v11, 1  ;;  %v333_v14 = vadd.f32 %v332_v12, %v331_v10  ;;  %p1328_p6 = pnand %p1327_p3, %p1321_p0 }
  0x47   : > { %v328_v15 = vadd.f32 %v327_v13, %v326_v11  ;;  %v334_v16 = vrot.slane %v333_v14, 1 }
  0x49   : > { %v335_v17 = vadd.f32 %v334_v16, %v333_v14  ;;  %v336_v18 = vmax.f32 %v328_v15, 1e-24 }
  0x4b   : > { %v337_v19 = vmax.f32 %v335_v17, 1e-24  ;;  %1280 = vrsqrt.f32 %v336_v18 }
  0x4d   : > { %1282 = vrsqrt.f32 %v337_v19 }
  0x55   : > { %v1281_v20 = vpop.eup %1280 }
  0x57   : > { %v1283_v21 = vpop.eup %1282 }
  0x58   : > { %v342_v22 = vcombine.low %v1281_v20, %v1283_v21 }
  0x5a   : > { %v344_v23 = vmul.f32 %v342_v22, %v206_v1 }
  0x5c   : > { %362 = vxpose.xlu0.b32.start.end [1/1] (short) %v344_v23, 128  ;;  %v360_v24 = vcombine.high %v344_v23, %v344_v23 }
  0x5e   : > { %1107 = vmatprep.subr.msk.mxu1 %vm220_vm0, %v360_v24 }
  0x5f   : > { %1108 = vmatpush1.msk.msra.mxu1 %vm220_vm0, %v344_v23 }
  0x99   : > { %394 = vxpose.xlu0.b32.start.end [1/1] (short) %v360_v24, 128 }
  0xbb   : > { %v212_v62 = vpop.permute.xlu1 %211 }
  0xc2   : > { %1278 = vset.pattern.permute.xlu0 %v1404_v28 }
  0xdc   : > { %v378_v29 = vpop.trf.xlu0 }
  0xdd   : > { %1109 = vmatmul.mubr.msk.f32.vlgmr.msra.gmra.mrb[0].mxu1 %vm216_vm1, %v378_v29 }
  0xde   : > { %600 = vmatprep.mubr.f32.mxu1 %v1403_v0 }
  0xe0   : > { %v379_v30 = vpop.trf.xlu0 }
  0xe1   : > { %1110 = vmatmul.mubr.msk.f32.gmra.mrb[2].mxu1 %vm216_vm1, %v379_v30 }
  0xe2   : > { %606 = vmatprep.mubr.f32.mxu1 %v1403_v0 }
  0xe4   : > { %v380_v31 = vpop.trf.xlu0 }
  0xe5   : > { %1111 = vmatmul.mubr.msk.f32.gmra.mrb[4].mxu1 %vm216_vm1, %v380_v31 }
  0xe6   : > { %612 = vmatprep.mubr.f32.mxu1 %v1403_v0 }
  0xe8   : > { %v381_v32 = vpop.trf.xlu0 }
  0xe9   : > { %1112 = vmatmul.mubr.msk.f32.gmra.mrb[6].mxu1 %vm216_vm1, %v381_v32 }
  0xea   : > { %618 = vmatprep.mubr.f32.mxu1 %v1403_v0 }
  0xec   : > { %v382_v33 = vpop.trf.xlu0 }
  0xed   : > { %1113 = vmatmul.mubr.msk.f32.gmra.mrb[8].mxu1 %vm216_vm1, %v382_v33 }
  0xee   : > { %624 = vmatprep.mubr.f32.mxu1 %v1403_v0 }
  0xf0   : > { %v383_v34 = vpop.trf.xlu0 }
  0xf1   : > { %1114 = vmatmul.mubr.msk.f32.gmra.mrb[10].mxu1 %vm216_vm1, %v383_v34 }
  0xf2   : > { %630 = vmatprep.mubr.f32.mxu1 %v1403_v0 }
  0xf4   : > { %v384_v35 = vpop.trf.xlu0 }
  0xf5   : > { %1115 = vmatmul.mubr.msk.f32.gmra.mrb[12].mxu1 %vm216_vm1, %v384_v35 }
  0xf6   : > { %636 = vmatprep.mubr.f32.mxu1 %v1403_v0 }
  0xf8   : > { %v385_v36 = vpop.trf.xlu0 }
  0xf9   : > { %1116 = vmatmul.mubr.msk.f32.gmra.mrb[14].mxu1 %vm216_vm1, %v385_v36 }
  0xfa   : > { %642 = vmatprep.mubr.f32.mxu1 %v1403_v0 }
  0xfc   : > { %v386_v37 = vpop.trf.xlu0 }
  0xfd   : > { %1117 = vmatmul.mubr.msk.f32.gmra.mrb[16].mxu1 %vm216_vm1, %v386_v37 }
  0xfe   : > { %648 = vmatprep.mubr.f32.mxu1 %v1403_v0 }
 0x100   : > { %v387_v38 = vpop.trf.xlu0 }
 0x101   : > { %1118 = vmatmul.mubr.msk.f32.gmra.mrb[18].mxu1 %vm216_vm1, %v387_v38 }
 0x102   : > { %654 = vmatprep.mubr.f32.mxu1 %v1403_v0 }
 0x104   : > { %v388_v39 = vpop.trf.xlu0 }
 0x105   : > { %1119 = vmatmul.mubr.msk.f32.gmra.mrb[20].mxu1 %vm216_vm1, %v388_v39 }
 0x106   : > { %660 = vmatprep.mubr.f32.mxu1 %v1403_v0 }
 0x108   : > { %v389_v40 = vpop.trf.xlu0 }
 0x109   : > { %1120 = vmatmul.mubr.msk.f32.gmra.mrb[22].mxu1 %vm216_vm1, %v389_v40 }
 0x10a   : > { %666 = vmatprep.mubr.f32.mxu1 %v1403_v0 }
 0x10c   : > { %v390_v41 = vpop.trf.xlu0 }
 0x10d   : > { %1121 = vmatmul.mubr.msk.f32.gmra.mrb[24].mxu1 %vm216_vm1, %v390_v41 }
 0x10e   : > { %672 = vmatprep.mubr.f32.mxu1 %v1403_v0 }
 0x110   : > { %v391_v42 = vpop.trf.xlu0 }
 0x111   : > { %1122 = vmatmul.mubr.msk.f32.gmra.mrb[26].mxu1 %vm216_vm1, %v391_v42  ;;  %v291_v61 = vpop.f32.mrb[0].mxu0 }
 0x112   : > { %678 = vmatprep.mubr.f32.mxu1 %v1403_v0  ;;  %v293_v63 = vpop.f32.mrb[1].mxu0  ;;  %v292_v1 = vadd.f32 %v291_v61, %v212_v62 }
 0x113   : > { %v294_v2 = vadd.f32 %v293_v63, %v212_v62 }
 0x114   : > { %v392_v43 = vpop.trf.xlu0  ;;  %v296_v3 = vmul.f32 %v292_v1, %v292_v1 }
 0x115   : > { %1123 = vmatmul.mubr.msk.f32.gmra.mrb[28].mxu1 %vm216_vm1, %v392_v43  ;;  %v297_v4 = vmul.f32 %v294_v2, %v294_v2 }
 0x116   : > { %684 = vmatprep.mubr.f32.mxu1 %v1403_v0  ;;  %v298_v5 = vsel %vm220_vm0, %v296_v3, 0.0 }
 0x117   : > { %v305_v6 = vsel %vm220_vm0, %v297_v4, 0.0  ;;  %v299_v7 = vrot.slane %v298_v5, 4 }
 0x118   : > { %v393_v44 = vpop.trf.xlu0  ;;  %v306_v8 = vrot.slane %v305_v6, 4 }
 0x119   : > { %1124 = vmatmul.mubr.msk.f32.gmra.mrb[30].mxu1 %vm216_vm1, %v393_v44  ;;  %v300_v9 = vadd.f32 %v299_v7, %v298_v5 }
 0x11a   : > { %690 = vmatprep.mubr.f32.mxu1 %v1403_v0  ;;  %v307_v10 = vadd.f32 %v306_v8, %v305_v6 }
 0x11b   : > { %v301_v11 = vrot.slane %v300_v9, 2 }
 0x11c   : > { %v410_v45 = vpop.trf.xlu0 }
 0x11d   : > { %1125 = vmatmul.mubr.msk.f32.gmra.mrb[32].mxu1 %vm216_vm1, %v410_v45  ;;  %v302_v12 = vadd.f32 %v301_v11, %v300_v9 }
 0x11e   : > { %696 = vmatprep.mubr.f32.mxu1 %v1403_v0 }
 0x11f   : > { %v303_v14 = vrot.slane %v302_v12, 1 }
 0x120   : > { %v411_v46 = vpop.trf.xlu0 }
 0x121   : > { %1126 = vmatmul.mubr.msk.f32.gmra.mrb[34].mxu1 %vm216_vm1, %v411_v46  ;;  %v304_v16 = vadd.f32 %v303_v14, %v302_v12 }
 0x122   : > { %702 = vmatprep.mubr.f32.mxu1 %v1403_v0 }
 0x123   : > { %v312_v18 = vmax.f32 %v304_v16, 1e-24 }
 0x124   : > { %v412_v47 = vpop.trf.xlu0 }
 0x125   : > { %1127 = vmatmul.mubr.msk.f32.gmra.mrb[36].mxu1 %vm216_vm1, %v412_v47  ;;  %1284 = vrsqrt.f32 %v312_v18 }
 0x126   : > { %708 = vmatprep.mubr.f32.mxu1 %v1403_v0 }
 0x128   : > { %v413_v48 = vpop.trf.xlu0 }
 0x129   : > { %1128 = vmatmul.mubr.msk.f32.gmra.mrb[38].mxu1 %vm216_vm1, %v413_v48 }
 0x12a   : > { %714 = vmatprep.mubr.f32.mxu1 %v1403_v0 }
 0x12c   : > { %v414_v49 = vpop.trf.xlu0 }
 0x12d   : > { %1129 = vmatmul.mubr.msk.f32.gmra.mrb[40].mxu1 %vm216_vm1, %v414_v49 }
 0x12e   : > { %720 = vmatprep.mubr.f32.mxu1 %v1403_v0 }
 0x12f   : > { %v1285_v20 = vpop.eup %1284 }
 0x130   : > { %v415_v50 = vpop.trf.xlu0  ;;  %v1627_v22 = vmul.f32 %v1285_v20, %v292_v1 }
 0x131   : > { %1130 = vmatmul.mubr.msk.f32.gmra.mrb[42].mxu1 %vm216_vm1, %v415_v50 }
 0x132   : > { %726 = vmatprep.mubr.f32.mxu1 %v1403_v0 }
 0x134   : > { %v416_v51 = vpop.trf.xlu0 }
 0x135   : > { %1131 = vmatmul.mubr.msk.f32.gmra.mrb[44].mxu1 %vm216_vm1, %v416_v51 }
 0x136   : > { %732 = vmatprep.mubr.f32.mxu1 %v1403_v0 }
 0x138   : > { %v417_v52 = vpop.trf.xlu0 }
 0x139   : > { %1132 = vmatmul.mubr.msk.f32.gmra.mrb[46].mxu1 %vm216_vm1, %v417_v52 }
 0x13a   : > { %738 = vmatprep.mubr.f32.mxu1 %v1403_v0 }
 0x13c   : > { %v418_v53 = vpop.trf.xlu0 }
 0x13d   : > { %1133 = vmatmul.mubr.msk.f32.gmra.mrb[48].mxu1 %vm216_vm1, %v418_v53 }
 0x13e   : > { %744 = vmatprep.mubr.f32.mxu1 %v1403_v0 }
 0x140   : > { %v419_v54 = vpop.trf.xlu0 }
 0x141   : > { %1134 = vmatmul.mubr.msk.f32.gmra.mrb[50].mxu1 %vm216_vm1, %v419_v54 }
 0x142   : > { %750 = vmatprep.mubr.f32.mxu1 %v1403_v0 }
 0x144   : > { %v420_v55 = vpop.trf.xlu0 }
 0x145   : > { %1135 = vmatmul.mubr.msk.f32.gmra.mrb[52].mxu1 %vm216_vm1, %v420_v55 }
 0x146   : > { %756 = vmatprep.mubr.f32.mxu1 %v1403_v0 }
 0x148   : > { %v421_v56 = vpop.trf.xlu0 }
 0x149   : > { %1136 = vmatmul.mubr.msk.f32.gmra.mrb[54].mxu1 %vm216_vm1, %v421_v56 }
 0x14a   : > { %762 = vmatprep.mubr.f32.mxu1 %v1403_v0 }
 0x14c   : > { %v422_v57 = vpop.trf.xlu0 }
 0x14d   : > { %1137 = vmatmul.mubr.msk.f32.gmra.mrb[56].mxu1 %vm216_vm1, %v422_v57 }
 0x14e   : > { %768 = vmatprep.mubr.f32.mxu1 %v1403_v0 }
 0x150   : > { %v423_v58 = vpop.trf.xlu0 }
 0x151   : > { %1138 = vmatmul.mubr.msk.f32.gmra.mrb[58].mxu1 %vm216_vm1, %v423_v58 }
 0x152   : > { %774 = vmatprep.mubr.f32.mxu1 %v1403_v0 }
 0x154   : > { %v424_v59 = vpop.trf.xlu0 }
 0x155   : > { %1139 = vmatmul.mubr.msk.f32.gmra.mrb[60].mxu1 %vm216_vm1, %v424_v59 }
 0x156   : > { %780 = vmatprep.mubr.f32.mxu1 %v1403_v0  ;;  %v308_v0 = vrot.slane %v307_v10, 2 }
 0x158   : > { %v425_v60 = vpop.trf.xlu0  ;;  %v309_v13 = vadd.f32 %v308_v0, %v307_v10 }
 0x159   : > { %1140 = vmatmul.mubr.msk.f32.gmra.mrb[62].mxu1 %vm216_vm1, %v425_v60 }
 0x15a   : > { %v310_v15 = vrot.slane %v309_v13, 1 }
 0x15c   : > { %v311_v17 = vadd.f32 %v310_v15, %v309_v13 }
 0x15e   : > { %v313_v19 = vmax.f32 %v311_v17, 1e-24 }
 0x160   : > { %1286 = vrsqrt.f32 %v313_v19 }
 0x16a   : > { %v1287_v21 = vpop.eup %1286 }
 0x16b   : > { %v1629_v23 = vmul.f32 %v1287_v21, %v294_v2 }
 0x16d   : > { %v348_v24 = vcombine.low %v1627_v22, %v1629_v23  ;;  %v1148_v25 = vcombine.low %v1629_v23, %v1629_v23 }
 0x16f   : > { %982 = vmatprep.mubr.f32.mxu0 %v1148_v25 }
 0x1b0   : > { %v596_v26 = vpop.f32.mrb[0].mxu1 }
 0x1b1   : > { %v598_v27 = vpop.f32.mrb[1].mxu1  ;;  %v787_v28 = vmax.f32 %v596_v26, 0.1 }
 0x1b2   : > { %v788_v29 = vmax.f32 %v598_v27, 0.1 }
 0x1b3   : > { %v851_v34 = vmul.f32 %v787_v28, %v787_v28 }
 0x1b4   : > { %v602_v30 = vpop.f32.mrb[2].mxu1  ;;  %v852_v36 = vmul.f32 %v788_v29, %v788_v29 }
 0x1b5   : > { %v789_v31 = vmax.f32 %v602_v30, 0.1  ;;  %v604_v32 = vpop.f32.mrb[3].mxu1 }
 0x1b6   : > { %v790_v33 = vmax.f32 %v604_v32, 0.1 }
 0x1b7   : > { %v853_v35 = vmul.f32 %v789_v31, %v789_v31 }
 0x1b8   : > { %v854_v37 = vmul.f32 %v790_v33, %v790_v33  ;;  %v608_v38 = vpop.f32.mrb[4].mxu1 }
 0x1b9   : > { %v1151_v39 = vpack.c.bf16 %v853_v35, %v851_v34  ;;  %v610_v40 = vpop.f32.mrb[5].mxu1  ;;  %v791_v42 = vmax.f32 %v608_v38, 0.1 }
 0x1ba   : > { %v1149_v41 = vpack.c.bf16 %v854_v37, %v852_v36  ;;  %v792_v43 = vmax.f32 %v610_v40, 0.1 }
 0x1bb   : > { %v855_v48 = vmul.f32 %v791_v42, %v791_v42 }
 0x1bc   : > { %v614_v44 = vpop.f32.mrb[6].mxu1  ;;  %1150 = vmatprep.subr.bf16.mxu0 %v1149_v41  ;;  %v856_v50 = vmul.f32 %v792_v43, %v792_v43 }
 0x1bd   : > { %v793_v45 = vmax.f32 %v614_v44, 0.1  ;;  %v616_v46 = vpop.f32.mrb[7].mxu1  ;;  %1152 = vmatpush1.bf16.xpose.msra.mxu0 %v1151_v39 }
 0x1be   : > { %v794_v47 = vmax.f32 %v616_v46, 0.1 }
 0x1bf   : > { %v857_v49 = vmul.f32 %v793_v45, %v793_v45 }
 0x1c0   : > { %v858_v51 = vmul.f32 %v794_v47, %v794_v47  ;;  %v620_v52 = vpop.f32.mrb[8].mxu1 }
 0x1c1   : > { %v1155_v53 = vpack.c.bf16 %v857_v49, %v855_v48  ;;  %v622_v54 = vpop.f32.mrb[9].mxu1  ;;  %v795_v56 = vmax.f32 %v620_v52, 0.1 }
 0x1c2   : > { %v1153_v55 = vpack.c.bf16 %v858_v51, %v856_v50  ;;  %v796_v57 = vmax.f32 %v622_v54, 0.1 }
 0x1c3   : > { %v859_v62 = vmul.f32 %v795_v56, %v795_v56 }
 0x1c4   : > { %v626_v58 = vpop.f32.mrb[10].mxu1  ;;  %1154 = vmatprep.subr.bf16.mxu0 %v1153_v55  ;;  %v860_v1 = vmul.f32 %v796_v57, %v796_v57 }
 0x1c5   : > { %v797_v59 = vmax.f32 %v626_v58, 0.1  ;;  %v628_v60 = vpop.f32.mrb[11].mxu1  ;;  %1156 = vmatpush1.bf16.xpose.msra.mxu0 %v1155_v53 }
 0x1c6   : > { %v798_v61 = vmax.f32 %v628_v60, 0.1 }
 0x1c7   : > { %v861_v63 = vmul.f32 %v797_v59, %v797_v59 }
 0x1c8   : > { %v862_v2 = vmul.f32 %v798_v61, %v798_v61  ;;  %v632_v3 = vpop.f32.mrb[12].mxu1 }
 0x1c9   : > { %v1159_v4 = vpack.c.bf16 %v861_v63, %v859_v62  ;;  %v634_v5 = vpop.f32.mrb[13].mxu1  ;;  %v799_v7 = vmax.f32 %v632_v3, 0.1 }
 0x1ca   : > { %v1157_v6 = vpack.c.bf16 %v862_v2, %v860_v1  ;;  %v800_v8 = vmax.f32 %v634_v5, 0.1 }
 0x1cb   : > { %v863_v12 = vmul.f32 %v799_v7, %v799_v7 }
 0x1cc   : > { %v638_v9 = vpop.f32.mrb[14].mxu1  ;;  %1158 = vmatprep.subr.bf16.mxu0 %v1157_v6  ;;  %v864_v14 = vmul.f32 %v800_v8, %v800_v8 }
 0x1cd   : > { %v801_v10 = vmax.f32 %v638_v9, 0.1  ;;  %v640_v11 = vpop.f32.mrb[15].mxu1  ;;  %1160 = vmatpush1.bf16.xpose.msra.mxu0 %v1159_v4 }
 0x1ce   : > { %v802_v0 = vmax.f32 %v640_v11, 0.1 }
 0x1cf   : > { %v865_v13 = vmul.f32 %v801_v10, %v801_v10 }
 0x1d0   : > { %v866_v15 = vmul.f32 %v802_v0, %v802_v0  ;;  %v644_v16 = vpop.f32.mrb[16].mxu1 }
 0x1d1   : > { %v1163_v17 = vpack.c.bf16 %v865_v13, %v863_v12  ;;  %v646_v18 = vpop.f32.mrb[17].mxu1  ;;  %v803_v20 = vmax.f32 %v644_v16, 0.1 }
 0x1d2   : > { %v1161_v19 = vpack.c.bf16 %v866_v15, %v864_v14  ;;  %v804_v21 = vmax.f32 %v646_v18, 0.1 }
 0x1d3   : > { %v867_v29 = vmul.f32 %v803_v20, %v803_v20 }
 0x1d4   : > { %v650_v25 = vpop.f32.mrb[18].mxu1  ;;  %1162 = vmatprep.subr.bf16.mxu0 %v1161_v19  ;;  %v868_v31 = vmul.f32 %v804_v21, %v804_v21 }
 0x1d5   : > { %v805_v26 = vmax.f32 %v650_v25, 0.1  ;;  %v652_v27 = vpop.f32.mrb[19].mxu1  ;;  %1164 = vmatpush1.bf16.xpose.msra.mxu0 %v1163_v17 }
 0x1d6   : > { %v806_v28 = vmax.f32 %v652_v27, 0.1 }
 0x1d7   : > { %v869_v30 = vmul.f32 %v805_v26, %v805_v26 }
 0x1d8   : > { %v870_v32 = vmul.f32 %v806_v28, %v806_v28  ;;  %v656_v33 = vpop.f32.mrb[20].mxu1 }
 0x1d9   : > { %v1167_v34 = vpack.c.bf16 %v869_v30, %v867_v29  ;;  %v658_v35 = vpop.f32.mrb[21].mxu1  ;;  %v807_v37 = vmax.f32 %v656_v33, 0.1 }
 0x1da   : > { %v1165_v36 = vpack.c.bf16 %v870_v32, %v868_v31  ;;  %v808_v38 = vmax.f32 %v658_v35, 0.1 }
 0x1db   : > { %v871_v43 = vmul.f32 %v807_v37, %v807_v37 }
 0x1dc   : > { %v662_v39 = vpop.f32.mrb[22].mxu1  ;;  %1166 = vmatprep.subr.bf16.mxu0 %v1165_v36  ;;  %v872_v45 = vmul.f32 %v808_v38, %v808_v38 }
 0x1dd   : > { %v809_v40 = vmax.f32 %v662_v39, 0.1  ;;  %v664_v41 = vpop.f32.mrb[23].mxu1  ;;  %1168 = vmatpush1.bf16.xpose.msra.mxu0 %v1167_v34 }
 0x1de   : > { %v810_v42 = vmax.f32 %v664_v41, 0.1 }
 0x1df   : > { %v873_v44 = vmul.f32 %v809_v40, %v809_v40 }
 0x1e0   : > { %v874_v46 = vmul.f32 %v810_v42, %v810_v42  ;;  %v668_v47 = vpop.f32.mrb[24].mxu1 }
 0x1e1   : > { %v1171_v48 = vpack.c.bf16 %v873_v44, %v871_v43  ;;  %v670_v49 = vpop.f32.mrb[25].mxu1  ;;  %v811_v51 = vmax.f32 %v668_v47, 0.1 }
 0x1e2   : > { %v1169_v50 = vpack.c.bf16 %v874_v46, %v872_v45  ;;  %v812_v52 = vmax.f32 %v670_v49, 0.1 }
 0x1e3   : > { %v875_v57 = vmul.f32 %v811_v51, %v811_v51 }
 0x1e4   : > { %v674_v53 = vpop.f32.mrb[26].mxu1  ;;  %1170 = vmatprep.subr.bf16.mxu0 %v1169_v50  ;;  %v876_v59 = vmul.f32 %v812_v52, %v812_v52 }
 0x1e5   : > { %v813_v54 = vmax.f32 %v674_v53, 0.1  ;;  %v676_v55 = vpop.f32.mrb[27].mxu1  ;;  %1172 = vmatpush1.bf16.xpose.msra.mxu0 %v1171_v48 }
 0x1e6   : > { %v814_v56 = vmax.f32 %v676_v55, 0.1 }
 0x1e7   : > { %v877_v58 = vmul.f32 %v813_v54, %v813_v54 }
 0x1e8   : > { %v878_v60 = vmul.f32 %v814_v56, %v814_v56  ;;  %v680_v61 = vpop.f32.mrb[28].mxu1 }
 0x1e9   : > { %v1175_v62 = vpack.c.bf16 %v877_v58, %v875_v57  ;;  %v682_v63 = vpop.f32.mrb[29].mxu1  ;;  %v815_v2 = vmax.f32 %v680_v61, 0.1 }
 0x1ea   : > { %v1173_v1 = vpack.c.bf16 %v878_v60, %v876_v59  ;;  %v816_v3 = vmax.f32 %v682_v63, 0.1 }
 0x1eb   : > { %v879_v8 = vmul.f32 %v815_v2, %v815_v2 }
 0x1ec   : > { %v686_v4 = vpop.f32.mrb[30].mxu1  ;;  %1174 = vmatprep.subr.bf16.mxu0 %v1173_v1  ;;  %v880_v10 = vmul.f32 %v816_v3, %v816_v3 }
 0x1ed   : > { %v817_v5 = vmax.f32 %v686_v4, 0.1  ;;  %v688_v6 = vpop.f32.mrb[31].mxu1  ;;  %1176 = vmatpush1.bf16.xpose.msra.mxu0 %v1175_v62 }
 0x1ee   : > { %v818_v7 = vmax.f32 %v688_v6, 0.1 }
 0x1ef   : > { %v881_v9 = vmul.f32 %v817_v5, %v817_v5 }
 0x1f0   : > { %v882_v11 = vmul.f32 %v818_v7, %v818_v7  ;;  %v692_v0 = vpop.f32.mrb[32].mxu1 }
 0x1f1   : > { %v1179_v12 = vpack.c.bf16 %v881_v9, %v879_v8  ;;  %v694_v13 = vpop.f32.mrb[33].mxu1  ;;  %v819_v15 = vmax.f32 %v692_v0, 0.1 }
 0x1f2   : > { %v1177_v14 = vpack.c.bf16 %v882_v11, %v880_v10  ;;  %v820_v16 = vmax.f32 %v694_v13, 0.1 }
 0x1f3   : > { %v883_v21 = vmul.f32 %v819_v15, %v819_v15 }
 0x1f4   : > { %v698_v17 = vpop.f32.mrb[34].mxu1  ;;  %1178 = vmatprep.subr.bf16.mxu0 %v1177_v14  ;;  %v884_v26 = vmul.f32 %v820_v16, %v820_v16 }
 0x1f5   : > { %v821_v18 = vmax.f32 %v698_v17, 0.1  ;;  %v700_v19 = vpop.f32.mrb[35].mxu1  ;;  %1180 = vmatpush1.bf16.xpose.msra.mxu0 %v1179_v12 }
 0x1f6   : > { %v822_v20 = vmax.f32 %v700_v19, 0.1 }
 0x1f7   : > { %v885_v25 = vmul.f32 %v821_v18, %v821_v18 }
 0x1f8   : > { %v886_v27 = vmul.f32 %v822_v20, %v822_v20  ;;  %v704_v28 = vpop.f32.mrb[36].mxu1 }
 0x1f9   : > { %v1183_v29 = vpack.c.bf16 %v885_v25, %v883_v21  ;;  %v706_v30 = vpop.f32.mrb[37].mxu1  ;;  %v823_v32 = vmax.f32 %v704_v28, 0.1 }
 0x1fa   : > { %v1181_v31 = vpack.c.bf16 %v886_v27, %v884_v26  ;;  %v824_v33 = vmax.f32 %v706_v30, 0.1 }
 0x1fb   : > { %v887_v38 = vmul.f32 %v823_v32, %v823_v32 }
 0x1fc   : > { %v710_v34 = vpop.f32.mrb[38].mxu1  ;;  %1182 = vmatprep.subr.bf16.mxu0 %v1181_v31  ;;  %v888_v40 = vmul.f32 %v824_v33, %v824_v33 }
 0x1fd   : > { %v825_v35 = vmax.f32 %v710_v34, 0.1  ;;  %v712_v36 = vpop.f32.mrb[39].mxu1  ;;  %1184 = vmatpush1.bf16.xpose.msra.mxu0 %v1183_v29 }
 0x1fe   : > { %v826_v37 = vmax.f32 %v712_v36, 0.1 }
 0x1ff   : > { %v889_v39 = vmul.f32 %v825_v35, %v825_v35 }
 0x200   : > { %v890_v41 = vmul.f32 %v826_v37, %v826_v37  ;;  %v716_v42 = vpop.f32.mrb[40].mxu1 }
 0x201   : > { %v1187_v43 = vpack.c.bf16 %v889_v39, %v887_v38  ;;  %v718_v44 = vpop.f32.mrb[41].mxu1  ;;  %v827_v46 = vmax.f32 %v716_v42, 0.1 }
 0x202   : > { %v1185_v45 = vpack.c.bf16 %v890_v41, %v888_v40  ;;  %v828_v47 = vmax.f32 %v718_v44, 0.1 }
 0x203   : > { %v891_v52 = vmul.f32 %v827_v46, %v827_v46 }
 0x204   : > { %v722_v48 = vpop.f32.mrb[42].mxu1  ;;  %1186 = vmatprep.subr.bf16.mxu0 %v1185_v45  ;;  %v892_v54 = vmul.f32 %v828_v47, %v828_v47 }
 0x205   : > { %v829_v49 = vmax.f32 %v722_v48, 0.1  ;;  %v724_v50 = vpop.f32.mrb[43].mxu1  ;;  %1188 = vmatpush1.bf16.xpose.msra.mxu0 %v1187_v43 }
 0x206   : > { %v830_v51 = vmax.f32 %v724_v50, 0.1 }
 0x207   : > { %v893_v53 = vmul.f32 %v829_v49, %v829_v49 }
 0x208   : > { %v894_v55 = vmul.f32 %v830_v51, %v830_v51  ;;  %v728_v56 = vpop.f32.mrb[44].mxu1 }
 0x209   : > { %v1191_v57 = vpack.c.bf16 %v893_v53, %v891_v52  ;;  %v730_v58 = vpop.f32.mrb[45].mxu1  ;;  %v831_v60 = vmax.f32 %v728_v56, 0.1 }
 0x20a   : > { %v1189_v59 = vpack.c.bf16 %v894_v55, %v892_v54  ;;  %v832_v61 = vmax.f32 %v730_v58, 0.1 }
 0x20b   : > { %v895_v3 = vmul.f32 %v831_v60, %v831_v60 }
 0x20c   : > { %v734_v62 = vpop.f32.mrb[46].mxu1  ;;  %1190 = vmatprep.subr.bf16.mxu0 %v1189_v59  ;;  %v896_v5 = vmul.f32 %v832_v61, %v832_v61 }
 0x20d   : > { %v833_v63 = vmax.f32 %v734_v62, 0.1  ;;  %v736_v1 = vpop.f32.mrb[47].mxu1  ;;  %1192 = vmatpush1.bf16.xpose.msra.mxu0 %v1191_v57 }
 0x20e   : > { %v834_v2 = vmax.f32 %v736_v1, 0.1 }
 0x20f   : > { %v897_v4 = vmul.f32 %v833_v63, %v833_v63 }
 0x210   : > { %v898_v6 = vmul.f32 %v834_v2, %v834_v2  ;;  %v740_v7 = vpop.f32.mrb[48].mxu1 }
 0x211   : > { %v1195_v8 = vpack.c.bf16 %v897_v4, %v895_v3  ;;  %v742_v9 = vpop.f32.mrb[49].mxu1  ;;  %v835_v11 = vmax.f32 %v740_v7, 0.1 }
 0x212   : > { %v1193_v10 = vpack.c.bf16 %v898_v6, %v896_v5  ;;  %v836_v0 = vmax.f32 %v742_v9, 0.1 }
 0x213   : > { %v899_v16 = vmul.f32 %v835_v11, %v835_v11 }
 0x214   : > { %v746_v12 = vpop.f32.mrb[50].mxu1  ;;  %1194 = vmatprep.subr.bf16.mxu0 %v1193_v10  ;;  %v900_v18 = vmul.f32 %v836_v0, %v836_v0 }
 0x215   : > { %v837_v13 = vmax.f32 %v746_v12, 0.1  ;;  %v748_v14 = vpop.f32.mrb[51].mxu1  ;;  %1196 = vmatpush1.bf16.xpose.msra.mxu0 %v1195_v8 }
 0x216   : > { %v838_v15 = vmax.f32 %v748_v14, 0.1 }
 0x217   : > { %v901_v17 = vmul.f32 %v837_v13, %v837_v13 }
 0x218   : > { %v902_v19 = vmul.f32 %v838_v15, %v838_v15  ;;  %v752_v20 = vpop.f32.mrb[52].mxu1 }
 0x219   : > { %v1199_v21 = vpack.c.bf16 %v901_v17, %v899_v16  ;;  %v754_v25 = vpop.f32.mrb[53].mxu1  ;;  %v839_v27 = vmax.f32 %v752_v20, 0.1 }
 0x21a   : > { %v1197_v26 = vpack.c.bf16 %v902_v19, %v900_v18  ;;  %v840_v28 = vmax.f32 %v754_v25, 0.1 }
 0x21b   : > { %v903_v33 = vmul.f32 %v839_v27, %v839_v27 }
 0x21c   : > { %v758_v29 = vpop.f32.mrb[54].mxu1  ;;  %1198 = vmatprep.subr.bf16.mxu0 %v1197_v26  ;;  %v904_v35 = vmul.f32 %v840_v28, %v840_v28 }
 0x21d   : > { %v841_v30 = vmax.f32 %v758_v29, 0.1  ;;  %v760_v31 = vpop.f32.mrb[55].mxu1  ;;  %1200 = vmatpush1.bf16.xpose.msra.mxu0 %v1199_v21 }
 0x21e   : > { %v842_v32 = vmax.f32 %v760_v31, 0.1 }
 0x21f   : > { %v905_v34 = vmul.f32 %v841_v30, %v841_v30 }
 0x220   : > { %v906_v36 = vmul.f32 %v842_v32, %v842_v32  ;;  %v764_v37 = vpop.f32.mrb[56].mxu1 }
 0x221   : > { %v1203_v38 = vpack.c.bf16 %v905_v34, %v903_v33  ;;  %v766_v39 = vpop.f32.mrb[57].mxu1  ;;  %v843_v41 = vmax.f32 %v764_v37, 0.1 }
 0x222   : > { %v1201_v40 = vpack.c.bf16 %v906_v36, %v904_v35  ;;  %v844_v42 = vmax.f32 %v766_v39, 0.1 }
 0x223   : > { %v907_v47 = vmul.f32 %v843_v41, %v843_v41 }
 0x224   : > { %v770_v43 = vpop.f32.mrb[58].mxu1  ;;  %1202 = vmatprep.subr.bf16.mxu0 %v1201_v40  ;;  %v908_v49 = vmul.f32 %v844_v42, %v844_v42 }
 0x225   : > { %v845_v44 = vmax.f32 %v770_v43, 0.1  ;;  %v772_v45 = vpop.f32.mrb[59].mxu1  ;;  %1204 = vmatpush1.bf16.xpose.msra.mxu0 %v1203_v38 }
 0x226   : > { %v846_v46 = vmax.f32 %v772_v45, 0.1 }
 0x227   : > { %v909_v48 = vmul.f32 %v845_v44, %v845_v44 }
 0x228   : > { %v910_v50 = vmul.f32 %v846_v46, %v846_v46  ;;  %v776_v51 = vpop.f32.mrb[60].mxu1 }
 0x229   : > { %v1207_v52 = vpack.c.bf16 %v909_v48, %v907_v47  ;;  %v778_v53 = vpop.f32.mrb[61].mxu1  ;;  %v847_v55 = vmax.f32 %v776_v51, 0.1 }
 0x22a   : > { %v1205_v54 = vpack.c.bf16 %v910_v50, %v908_v49  ;;  %v848_v56 = vmax.f32 %v778_v53, 0.1 }
 0x22b   : > { %v911_v61 = vmul.f32 %v847_v55, %v847_v55 }
 0x22c   : > { %v782_v57 = vpop.f32.mrb[62].mxu1  ;;  %1206 = vmatprep.subr.bf16.mxu0 %v1205_v54  ;;  %v912_v63 = vmul.f32 %v848_v56, %v848_v56 }
 0x22d   : > { %v849_v58 = vmax.f32 %v782_v57, 0.1  ;;  %v784_v59 = vpop.f32.mrb[63].mxu1  ;;  %1208 = vmatpush1.bf16.xpose.msra.mxu0 %v1207_v52 }
 0x22e   : > { %v850_v60 = vmax.f32 %v784_v59, 0.1 }
 0x22f   : > { %v913_v62 = vmul.f32 %v849_v58, %v849_v58 }
 0x230   : > { %v914_v1 = vmul.f32 %v850_v60, %v850_v60 }
 0x231   : > { %v1211_v2 = vpack.c.bf16 %v913_v62, %v911_v61 }
 0x232   : > { %v1209_v3 = vpack.c.bf16 %v914_v1, %v912_v63 }
 0x234   : > { %1210 = vmatprep.subr.bf16.mxu0 %v1209_v3 }
 0x235   : > { %1212 = vmatpush1.bf16.xpose.msra.mxu0 %v1211_v2 }
 0x23c   : > { %983 = vmatmul.mubr.f32.vlgmr.msra.gmra.mrb[2].mxu0 %v348_v24 }
 0x30f   : > { %v984_v4 = vpop.f32.mrb[2].mxu0 }
 0x310   : > { %v986_v5 = vpop.f32.mrb[3].mxu0 }
 0x311   : > { %v991_v6 = vcombine.low %v984_v4, %v986_v5 }
 0x313   : > { %993 = vst [vmem:[%s200_s19] sm:$0xff] %v991_v6 }
 0x314   : > { %1331 = shalt.err (!%p1328_p6)
}
 0x315   : > { %s1332_s5 = scalar_lea.hbm %s1644_s28, 128  ;;  %s1336_s24 = scalar_lea.hbm %s1696_s3, 256 }
 0x316   : > { %p1333_p4 = scmp.ne.s32.totalorder %s1644_s28, %s1332_s5  ;;  %p1337_p1 = scmp.lt.u32.totalorder %s1644_s28, %s1696_s3 }
 0x317   : > { %p1338_p2 = scmp.lt.u32.totalorder %s1336_s24, %s1332_s5  ;;  %p1340_p8 = scmp.lt.u32.totalorder %s1332_s5, %s1644_s28 }
 0x318   : > { %p1334_p10 = pnand %p1333_p4, %p1705_p9 }
 0x319   : > { %p1339_p5 = por %p1338_p2, %p1337_p1 }
 0x31a   : > { %p1335_p12 = pneg %p1334_p10 }
 0x31b   : > { %p1341_p11 = por %p1340_p8, %p1339_p5 }
 0x31d   : > { %p1342_p0 = pnand %p1341_p11, %p1335_p12 }
 0x31f   : > { %1345 = shalt.err (!%p1342_p0)
}
 0x320   : > { %1215 = dma.vmem_to_hbm [thread:$0]  (%p1705_p9), %s1646_s21, 128, %s1644_s28, %s995_s29  }
 0x321 PF: > { %s1023_s10 = sand.u32 1, %s1380_s12   ;;  %p1706_p7 = scmp.ne.s32.totalorder %s1701_s27, 0 }
 0x322   : > { %p1707_p13 = scmp.ge.s32.totalorder %s1400_s17, 2  ;;  %s1024_s18 = scalar_lea.sflag [#allocation6], %s1023_s10 }
 0x324   : > { %p1222_p3 = pnand %p1707_p13, %p1706_p7 }
 0x326   : > { %1375 = dma.done.wait (!%p1222_p3), %s1024_s18, 128  }
 0x327   : > { %1377 = vsyncadd (!%p1222_p3), %s1024_s18, 4294967168  ;;  %s19_s17 = sadd.s32 1, %s1400_s17   ;;  %s1708_s12 = smov %s1384_s13 }
 0x328   : > { %p16_p6 = scmp.ge.s32.totalorder %s19_s17, 4   ;;  %s1709_s13 = smov %s1388_s14 }
 0x329   : > { %s1710_s14 = smov %s1482_s26  ;;  %s1711_s15 = smov %s1396_s16 }
 0x32a   : > { %s1712_s16 = smov %s1714_s20  ;;  %18 = sbr.rel (!%p16_p6) target bundleno = 6 (0x6), region = 82 }
 0x331   :  { %1029 = vsyncpa [#allocation5], 1 }
 0x332   :  { %1031 = vsyncpa [#allocation5 + $0x1], 1 }
 0x333   :  { %1032 = vsyncpa [#allocation6], 1 }
 0x334   :  { %1034 = vsyncpa [#allocation6 + $0x1], 1 }

</bundles_post_ra>
